<compile_context>
chip_gen: v7x
topology: tpu7x:2x2x1
jax: 0.10.0
libtpu: 0.0.40
codegen_flags: <defaults>
</compile_context>

<pallas_src>
import math

import jax
import jax.numpy as jnp
from jax.experimental import pallas as pl
from jax.experimental.pallas import tpu as pltpu

INPUT_SIZE = 8      # diabetes.csv has 8 feature columns (Outcome dropped)
HIDDEN_SIZE = 125
OUTPUT_SIZE = 1

MAX_TB = 2048       # max batch-tile (rows) per grid step


def _round_up(n, m):
    return ((n + m - 1) // m) * m


# --------------------------------------------------------------------------
# Kernel: one grid step = one (tb, 8) tile of x -> sigmoid(x @ W_eff + b_eff)
# --------------------------------------------------------------------------
def _folded_affine_sigmoid_kernel(x_ref, w_ref, b_ref, o_ref):
    # x_ref: (tb, 8) f32 VMEM | w_ref: (1, 8) f32 VMEM (W_eff^T, resident)
    # b_ref: (1, 1) f32 SMEM  | o_ref: (tb, 1) f32 VMEM
    # Exact f32: VPU broadcast-multiply + XLU lane reduce over K=8 (no bf16
    # MXU truncation needed for such a tiny contraction).
    z = jnp.sum(x_ref[...] * w_ref[...], axis=1, keepdims=True) + b_ref[0, 0]
    # sigmoid(z) = 1 / (1 + exp(-z)); exp + approx reciprocal stay on the EUP.
    o_ref[...] = pl.reciprocal(1.0 + jnp.exp(-z), approx=True)


def simple_nn_2_pallas(x, folded):
    """x: (B, INPUT_SIZE) float32.  folded: (W_eff^T (1,8) f32, b_eff (1,1) f32)."""
    w_row, b_eff = folded
    B, F = x.shape
    assert F == INPUT_SIZE, f"expected {INPUT_SIZE} input features, got {F}"

    # Batch-tile heuristic:
    #  - B < 8   : single full-array block (block dim == array dim is legal)
    #  - B <= 16 : 8-row blocks
    #  - else    : big tiles, but always >= 2 grid steps so v7x megacore can
    #              split the "parallel" axis; capped at MAX_TB for huge B.
    if B < 8:
        tb = B
    elif B <= 16:
        tb = 8
    else:
        tb = min(MAX_TB, _round_up(pl.cdiv(B, 2), 8))
    grid = pl.cdiv(B, tb)   # ragged tail handled by masked partial blocks

    out = pl.pallas_call(
        _folded_affine_sigmoid_kernel,
        out_shape=jax.ShapeDtypeStruct((B, OUTPUT_SIZE), jnp.float32),
        grid=(grid,),
        in_specs=[
            pl.BlockSpec((tb, INPUT_SIZE), lambda i: (i, 0)),   # x tile
            pl.BlockSpec((1, INPUT_SIZE), lambda i: (0, 0)),    # W_eff^T (resident)
            pl.BlockSpec(memory_space=pltpu.MemorySpace.SMEM),  # b_eff scalar
        ],
        out_specs=pl.BlockSpec((tb, OUTPUT_SIZE), lambda i: (i, 0)),
        compiler_params=pltpu.CompilerParams(
            dimension_semantics=("parallel",)),
    )(x.astype(jnp.float32), w_row, b_eff)
    return out


# --------------------------------------------------------------------------
# Parameters: PyTorch nn.Linear default init, plus the exact affine fold.
# --------------------------------------------------------------------------
def _init_linear(key, fan_in, fan_out):
    """nn.Linear default init: uniform(+/- 1/sqrt(fan_in)); stored as (in, out)."""
    kw, kb = jax.random.split(key)
    bound = 1.0 / math.sqrt(fan_in)
    w = jax.random.uniform(kw, (fan_in, fan_out), jnp.float32, -bound, bound)
    b = jax.random.uniform(kb, (1, fan_out), jnp.float32, -bound, bound)
    return w, b


def make_params(key):
    k1, k2, k3, k4 = jax.random.split(key, 4)
    w1, b1 = _init_linear(k1, INPUT_SIZE, HIDDEN_SIZE)
    w2, b2 = _init_linear(k2, HIDDEN_SIZE, HIDDEN_SIZE)
    w3, b3 = _init_linear(k3, HIDDEN_SIZE, HIDDEN_SIZE)
    w4, b4 = _init_linear(k4, HIDDEN_SIZE, OUTPUT_SIZE)
    return dict(w1=w1, b1=b1, w2=w2, b2=b2, w3=w3, b3=b3, w4=w4, b4=b4)


def fold_params(raw):
    """Exact composition of the four Linear layers (done once, f32, HIGHEST)."""
    hi = jax.lax.Precision.HIGHEST
    w, b = raw["w1"], raw["b1"]
    for wk, bk in ((raw["w2"], raw["b2"]),
                   (raw["w3"], raw["b3"]),
                   (raw["w4"], raw["b4"])):
        w = jnp.dot(w, wk, precision=hi)
        b = jnp.dot(b, wk, precision=hi) + bk
    # W_eff: (INPUT_SIZE, OUTPUT_SIZE) -> store transposed (1, INPUT_SIZE) so
    # the kernel can lane-broadcast it against each (tb, 8) tile of x.
    return jnp.transpose(w), b          # (1, 8), (1, 1)


def reference_forward(x, raw):
    """Layer-by-layer f32 reference (matches the PyTorch forward)."""
    hi = jax.lax.Precision.HIGHEST
    h = jnp.dot(x, raw["w1"], precision=hi) + raw["b1"]
    h = jnp.dot(h, raw["w2"], precision=hi) + raw["b2"]
    h = jnp.dot(h, raw["w3"], precision=hi) + raw["b3"]
    z = jnp.dot(h, raw["w4"], precision=hi) + raw["b4"]
    return jax.nn.sigmoid(z)


if __name__ == "__main__":
    key = jax.random.PRNGKey(0)
    kx, kp = jax.random.split(key)

    raw_params = make_params(kp)
    folded = fold_params(raw_params)

    # B=19 : ragged small batch (partial last block, grid=2)
    # B=300: multi-step "parallel" grid (tb=152, grid=2, partial second block)
    for B in (19, 300):
        x = jax.random.normal(jax.random.fold_in(kx, B), (B, INPUT_SIZE),
                              jnp.float32)
        out = jax.block_until_ready(simple_nn_2_pallas(x, folded))
        assert out.shape == (B, OUTPUT_SIZE)

        ref = reference_forward(x, raw_params)
        max_err = float(jnp.max(jnp.abs(out - ref)))
        # Only deviations: one extra f32 rounding from the fold and the EUP
        # approximate reciprocal in the sigmoid (output is in [0, 1]).
        assert jnp.allclose(out, ref, atol=1e-2, rtol=1e-2), (
            f"mismatch vs f32 reference at B={B}: max abs err {max_err}")

    print("KERNEL_OK")
</pallas_src>

<mosaic_0001>
module attributes {stable_mosaic.version = 11 : i64} {
  func.func @_folded_affine_sigmoid_kernel(%arg0: i32, %arg1: memref<16x8xf32, #tpu.memory_space<vmem>>, %arg2: memref<1x8xf32, #tpu.memory_space<vmem>>, %arg3: memref<1x1xf32, #tpu.memory_space<smem>>, %arg4: memref<16x1xf32, #tpu.memory_space<vmem>>) attributes {dimension_semantics = [#tpu.dimension_semantics<parallel>], iteration_bounds = array<i64: 2>, scalar_prefetch = 0 : i64, scratch_operands = 0 : i64, tpu.core_type = #tpu.core_type<tc>, window_params = [{transform_indices = @transform_0, window_bounds = array<i64: 16, 8>}, {pipeline_mode = #tpu.pipeline_mode<synchronous>, transform_indices = @transform_1, window_bounds = array<i64: 1, 8>}, {transform_indices = @transform_2, window_bounds = array<i64: 1, 1>}, {transform_indices = @transform_3, window_bounds = array<i64: 16, 1>}]} {
    %c0 = arith.constant 0 : index
    %c0_0 = arith.constant 0 : index
    %0 = vector.load %arg1[%c0, %c0_0] : memref<16x8xf32, #tpu.memory_space<vmem>>, vector<16x8xf32>
    %c0_1 = arith.constant 0 : index
    %c0_2 = arith.constant 0 : index
    %1 = vector.load %arg2[%c0_1, %c0_2] : memref<1x8xf32, #tpu.memory_space<vmem>>, vector<1x8xf32>
    %2 = vector.broadcast %1 : vector<1x8xf32> to vector<16x8xf32>
    %3 = arith.mulf %0, %2 : vector<16x8xf32>
    %cst = arith.constant dense<0.000000e+00> : vector<16xf32>
    %4 = vector.multi_reduction <add>, %3, %cst [1] : vector<16x8xf32> to vector<16xf32>
    %5 = vector.shape_cast %4 : vector<16xf32> to vector<16x1xf32>
    %c0_3 = arith.constant 0 : index
    %c0_4 = arith.constant 0 : index
    %6 = memref.load %arg3[%c0_3, %c0_4] : memref<1x1xf32, #tpu.memory_space<smem>>
    %7 = vector.broadcast %6 : f32 to vector<16x1xf32>
    %8 = arith.addf %5, %7 : vector<16x1xf32>
    %cst_5 = arith.constant 0.000000e+00 : f32
    %9 = vector.broadcast %cst_5 : f32 to vector<16x1xf32>
    %10 = arith.subf %9, %8 : vector<16x1xf32>
    %11 = math.exp %10 : vector<16x1xf32>
    %cst_6 = arith.constant 1.000000e+00 : f32
    %12 = vector.broadcast %cst_6 : f32 to vector<16x1xf32>
    %13 = arith.addf %12, %11 : vector<16x1xf32>
    %14 = tpu.reciprocal %13 {approx = true} : vector<16x1xf32> -> vector<16x1xf32>
    %c0_7 = arith.constant 0 : index
    %c0_8 = arith.constant 0 : index
    %15 = vector.load %arg4[%c0_7, %c0_8] : memref<16x1xf32, #tpu.memory_space<vmem>>, vector<16x1xf32>
    tpu.vector_store %arg4[%c0_7, %c0_8], %14 {strides = array<i32>} : memref<16x1xf32, #tpu.memory_space<vmem>>, vector<16x1xf32>,
    return
  }
  func.func @transform_0(%arg0: i32) -> (i32, i32) {
    %c0_i32 = arith.constant 0 : i32
    %c0_i32_0 = arith.constant 0 : i32
    return %arg0, %c0_i32 : i32, i32
  }
  func.func @transform_1(%arg0: i32) -> (i32, i32) {
    %c0_i32 = arith.constant 0 : i32
    %c0_i32_0 = arith.constant 0 : i32
    %c0_i32_1 = arith.constant 0 : i32
    return %c0_i32, %c0_i32_0 : i32, i32
  }
  func.func @transform_2(%arg0: i32) -> (i32, i32) {
    %c0_i32 = arith.constant 0 : i32
    %c0_i32_0 = arith.constant 0 : i32
    %c0_i32_1 = arith.constant 0 : i32
    return %c0_i32, %c0_i32_0 : i32, i32
  }
  func.func @transform_3(%arg0: i32) -> (i32, i32) {
    %c0_i32 = arith.constant 0 : i32
    %c0_i32_0 = arith.constant 0 : i32
    return %arg0, %c0_i32 : i32, i32
  }
}

</mosaic_0001>

<bundles_post_ra>
// kernel: tpu_custom_call.1
= control target key start
LH: loop header
LB: loop body
LE: loop exit
PB: predicated region body
PF: predicated region fallthrough
CT: control target
= control target key end

     0   :  { %s768_s0 = inlined_call_operand.vmem [shape: f32[19,8], index: 0, kind: input, shape index: {}]   ;;  %s769_s1 = inlined_call_operand.vmem [shape: f32[1,8], index: 1, kind: input, shape index: {}]   ;;  %s770_s2 = inlined_call_operand.<no memory space> [shape: f32[1,1], index: 2, kind: input, shape index: {}]   ;;  %s771_s3 = inlined_call_operand.vmem [shape: f32[19,1], index: 3, kind: output, shape index: {}]  }
   0x1   :  { %8 = sst [smem:[#allocation2]] %s770_s2 }
   0x2   :  { %s682_s14 = smov 0   ;;  %s684_s15 = smov 0  }
   0x3   :  { %s686_s16 = smov 0  }
   0x4 LB: > { %s695_s2 = sadd.s32 4294967295, %s625_s16   ;;  %s697_s17 = sadd.s32 1, %s625_s16   ;;  %s625_s16 = sphi %s686_s16, %s775_s16   ;;  %s621_s15 = sphi %s684_s15, %s774_s15   ;;  %s617_s14 = sphi %s682_s14, %s773_s14  }
   0x5   : > { %s86_s18 = ssub.s32 %s625_s16, %s697_s17  ;;  %s89_s19 = sadd.s32 1, %s621_s15 }
   0x6   : > { %p87_p0 = scmp.eq.s32.totalorder %s86_s18, 0  ;;  %p99_p1 = scmp.ne.s32.totalorder %s621_s15, %s617_s14 }
   0x7   : > { %p100_p2 = scmp.eq.s32.totalorder %s695_s2, 1  ;;  %p450_p3 = scmp.ge.s32.totalorder %s625_s16, 1 }
   0x8   : > { %s705_s20 = scalar_select %p87_p0, %s621_s15, %s89_s19  }
   0x9   : > { %p707_p4 = por %p100_p2, %p99_p1  ;;  %p147_p5 = scmp.lt.s32.totalorder %s625_s16, 3 }
   0xb   : > { %p148_p6 = pnand %p450_p3, %p147_p5 }
   0xc   : > { %s712_s22 = sshll.u32 (!%p148_p6), %s695_s2, 1  ;;  %v454_v0 = vld [vmem:[%s769_s1] ss:$0 sm:$0xff] (!%p148_p6)  ;;  %vm204_vm0 = vcmask (!%p148_p6), 64512   ;;  %s211_s30 = sld [smem:[#allocation2]] (!%p148_p6)  ;;  %vm225_vm1 = vcmask (!%p148_p6), 7168  }
   0xd   : > { %151 = sbr.rel (%p148_p6) target bundleno = 254 (0xfe), region = 32  ;;  %p179_p7 = scmp.lt.s32.totalorder (!%p148_p6), %s712_s22, 2 }
   0xe   : > { %s171_s4 = sand.u32 (!%p148_p6), 1, %s617_s14  }
   0xf   : > { %s451_s5 = sshll.u32 (!%p148_p6), %s171_s4, 4 }
  0x10   : > { %s723_s6 = scalar_lea.vmem (!%p148_p6), [#allocation3], %s451_s5  }
  0x12   : > { %v212_v7 = vstv (!%p148_p6), %s211_s30 }
  0x14   : > { %s180_s23 = scalar_select %p179_p7, %s712_s22, 2 }
  0x15   : > { %s236_s7 = ssub.s32 (%p707_p4), 3, %s712_s22  ;;  %s472_s8 = sshll.u32 (%p707_p4), %s695_s2, 4 }
  0x16   : > { %s453_s24 = sshll.u32 %s180_s23, 3  ;;  %p237_p8 = scmp.lt.s32.totalorder (%p707_p4), %s236_s7, 2 }
  0x17   : > { %s182_s29 = scalar_lea.vmem %s768_s0, %s453_s24  ;;  %s734_s11 = scalar_lea.vmem (%p707_p4), %s771_s3, %s472_s8  }
  0x18   : > { %v193_v1 = vld [vmem:[%s182_s29] sm:$0xff]  ;;  %v194_v2 = vld [vmem:[%s182_s29 + $0x8] sm:$0xff] }
  0x19   : > { %v202_v3 = vmul.f32 %v454_v0, %v193_v1  ;;  %v203_v4 = vmul.f32 %v454_v0, %v194_v2 }
  0x1b   : > { %v205_v5 = vsel %vm204_vm0, %v202_v3, 0.0  ;;  %v208_v6 = vsel %vm204_vm0, %v203_v4, 0.0 }
  0x1c   : > { %206 = vadd.xlane.f32.xlu0 %v205_v5 }
  0x20   : > { %209 = vadd.xlane.f32.xlu0 %v208_v6 }
  0xa9   : > { %v207_v8 = vpop.xlane.xlu0 %206 }
  0xaa   : > { %v213_v9 = vadd.f32 %v212_v7, %v207_v8 }
  0xac   : > { %v215_v10 = vsub.f32 0.0, %v213_v9 }
  0xad   : > { %v210_v11 = vpop.xlane.xlu0 %209 }
  0xae   : > { %v217_v12 = vmul.f32 1.442695, %v215_v10  ;;  %v214_v13 = vadd.f32 %v212_v7, %v210_v11 }
  0xb0   : > { %563 = vpow2.f32 %v217_v12  ;;  %v216_v14 = vsub.f32 0.0, %v214_v13 }
  0xb2   : > { %v219_v15 = vmul.f32 1.442695, %v216_v14 }
  0xb4   : > { %565 = vpow2.f32 %v219_v15 }
  0xba   : > { %v564_v16 = vpop.eup %563 }
  0xbb   : > { %v221_v17 = vadd.f32 1.0, %v564_v16 }
  0xbd   : > { %567 = vrcp.f32 %v221_v17 }
  0xbe   : > { %v566_v18 = vpop.eup %565 }
  0xbf   : > { %v222_v19 = vadd.f32 1.0, %v566_v18 }
  0xc1   : > { %569 = vrcp.f32 %v222_v19 }
  0xc6   : > { %234 = sbr.rel (!%p707_p4) target bundleno = 254 (0xfe), region = 36 }
  0xc7   : > { %v568_v20 = vpop.eup %567 }
  0xc8   : > { %226 = vst.msk [vmem:[%s723_s6] sm:$0xff] %vm225_vm1, %v568_v20 }
  0xcb   : > { %v570_v21 = vpop.eup %569 }
  0xcc   : > { %227 = vst.msk [vmem:[%s723_s6 + $0x8] sm:$0xff] %vm225_vm1, %v570_v21 }
  0xcd   : > { %s777_s7 = smov (!%p237_p8, %s236_s7), 2 }
  0xce   : > { %s457_s12 = sshll.u32 %s777_s7, 7 }
  0xcf   : > { %p460_p9 = scmp.eq.s32.totalorder %s457_s12, 0 }
  0xd0   : > { %s740_s13 = sshrl.u32 (!%p460_p9), %s777_s7, 1 }
  0xd1   : > { %245 = sbr.rel (%p460_p9) target bundleno = 254 (0xfe), region = 40  ;;  %p461_p10 = scmp.le.s32.totalorder (!%p460_p9), %s740_s13, 0 }
  0xd8   : > { %403 = sbr.rel (%p461_p10) target bundleno = 233 (0xe9), region = 116  ;;  %s627_s14 = smov (!%p461_p10), %s734_s11  }
  0xd9   : > { %s631_s16 = smov (!%p461_p10), %s723_s6   ;;  %s635_s2 = smov (!%p461_p10), 0  }
  0xda   : > { %s639_s18 = smov (!%p461_p10), 0  }
  0xdf LB: >> { %v309_v22 = vld [vmem:[%s633_s16] sm:$0xff]  ;;  %v311_v23 = vld [vmem:[%s633_s16 + $0x8] sm:$0xff]  ;;  %s313_s19 = sadd.s32 1, %s637_s2  ;;  %s303_s18 = sadd.s32 1, %s641_s18   ;;  %s641_s18 = sphi %s639_s18, %s303_s18   ;;  %s637_s2 = sphi %s635_s2, %s636_s2   ;;  %s633_s16 = sphi %s631_s16, %s318_s16   ;;  %s629_s14 = sphi %s627_s14, %s319_s14  }
  0xe0   : >> { %310 = vst [vmem:[%s629_s14] sm:$0xff] %v309_v22  ;;  %312 = vst [vmem:[%s629_s14 + $0x8] sm:$0xff] %v311_v23  ;;  %p314_p11 = scmp.ge.s32.totalorder %s313_s19, %s740_s13  ;;  %p302_p12 = scmp.ge.s32.totalorder %s303_s18, %s740_s13 }
  0xe2   : >> { %s779_s19 = smov (%p314_p11, %s313_s19), 0  ;;  %305 = sbr.rel (!%p302_p12) target bundleno = 223 (0xdf), region = 122 }
  0xe3   : >> { %s462_s21 = sshll.u32 %s779_s19, 4  ;;  %s636_s2 = smov %s779_s19  }
  0xe4   : >> { %s318_s16 = scalar_lea.vmem %s723_s6, %s462_s21 [#allocation3]   ;;  %s319_s14 = scalar_lea.vmem %s734_s11, %s462_s21  }
  0xe9 PF: > { %s750_s22 = sand.u32 1, %s777_s7   ;;  %s473_s23 = sshll.u32 %s740_s13, 4 }
  0xea   : > { %s324_s24 = scalar_lea.vmem %s723_s6, %s473_s23 [#allocation3]   ;;  %s326_s25 = scalar_lea.vmem %s734_s11, %s473_s23  }
  0xeb   : > { %p467_p13 = scmp.le.s32.totalorder %s750_s22, 0 }
  0xec   : > { %s643_s26 = smov (!%p467_p13), %s326_s25   ;;  %s647_s27 = smov (!%p467_p13), %s324_s24  }
  0xed   : > { %417 = sbr.rel (%p467_p13) target bundleno = 254 (0xfe), region = 127  ;;  %s651_s28 = smov (!%p467_p13), 0  }
  0xee   : > { %s655_s29 = smov (!%p467_p13), 0  }
  0xf4 LB: >> { %v336_v24 = vld [vmem:[%s649_s27] sm:$0xff]  ;;  %s338_s30 = sadd.s32 1, %s653_s28  ;;  %s330_s29 = sadd.s32 1, %s657_s29   ;;  %s657_s29 = sphi %s655_s29, %s330_s29   ;;  %s653_s28 = sphi %s651_s28, %s652_s28   ;;  %s649_s27 = sphi %s647_s27, %s343_s27   ;;  %s645_s26 = sphi %s643_s26, %s344_s26  }
  0xf5   : >> { %337 = vst [vmem:[%s645_s26] sm:$0xff] %v336_v24  ;;  %p339_p0 = scmp.ge.s32.totalorder %s338_s30, %s750_s22  ;;  %p329_p1 = scmp.ge.s32.totalorder %s330_s29, %s750_s22 }
  0xf7   : >> { %s781_s30 = smov (%p339_p0, %s338_s30), 0  ;;  %332 = sbr.rel (!%p329_p1) target bundleno = 244 (0xf4), region = 133 }
  0xf8   : >> { %s468_s4 = sshll.u32 %s781_s30, 3  ;;  %s652_s28 = smov %s781_s30  }
  0xf9   : >> { %s343_s27 = scalar_lea.vmem %s324_s24, %s468_s4 [#allocation3]   ;;  %s344_s26 = scalar_lea.vmem %s326_s25, %s468_s4  }
  0xfe PF: > { %p11_p2 = scmp.ge.s32.totalorder %s697_s17, 4   ;;  %s773_s14 = smov %s621_s15 }
  0xff   : > { %s774_s15 = smov %s705_s20  ;;  %s775_s16 = smov %s697_s17 }
 0x100   :  { %13 = sbr.rel (!%p11_p2) target bundleno = 4 (0x4), region = 144 }

</bundles_post_ra>
